<compile_context>
chip_gen: v7x
topology: tpu7x:2x2x1
jax: 0.10.0
libtpu: 0.0.40
codegen_flags: <defaults>
</compile_context>

<pallas_src>
import numpy as np
import jax
import jax.numpy as jnp
from jax import lax
from jax.experimental import pallas as pl
from jax.experimental.pallas import tpu as pltpu


# ----------------------------------------------------------------------------
# Host-side pooling matrices (exact torch AdaptiveAvgPool2d bin semantics)
# ----------------------------------------------------------------------------
def _adaptive_pool_matrix(in_size: int, out_size: int) -> np.ndarray:
    """Row-stochastic matrix reproducing torch AdaptiveAvgPool bin semantics."""
    m = np.zeros((out_size, in_size), dtype=np.float32)
    for i in range(out_size):
        start = (i * in_size) // out_size
        end = -(-((i + 1) * in_size) // out_size)  # ceil div
        m[i, start:end] = 1.0 / float(end - start)
    return m


# ----------------------------------------------------------------------------
# VMEM accounting (padded tile shapes) + generation-aware budget
# ----------------------------------------------------------------------------
def _round_up(x: int, m: int) -> int:
    return ((x + m - 1) // m) * m


def _padded_bytes(shape, itemsize: int) -> int:
    """Bytes of a VMEM buffer once the last dim pads to 128 lanes and the
    second-to-last pads to the dtype sublane tile (8 f32 / 16 bf16 / 32 i8)."""
    dims = list(shape)
    if len(dims) == 1:
        dims = [1] + dims
    sub = 8 * max(1, 4 // itemsize)
    dims[-1] = _round_up(dims[-1], 128)
    dims[-2] = _round_up(dims[-2], sub)
    n = 1
    for d in dims:
        n *= d
    return n * itemsize


def _estimate_vmem_bytes(tb, h, w, s, in_item, out_item) -> int:
    """Conservative per-grid-step VMEM estimate for the pooling kernel."""
    in_sub = 8 * max(1, 4 // in_item)
    total = 0
    total += 2 * _padded_bytes((tb, h, w), in_item)      # input tile, double-buffered
    total += 2 * _padded_bytes((tb, s, s), out_item)     # output tile, double-buffered
    total += 2 * _padded_bytes((s, h), 4)                # Ph (constant index, 2 bufs)
    total += 2 * _padded_bytes((w, s), in_item)          # PwT (constant index, 2 bufs)
    total += _padded_bytes((tb, h, s), 4)                # f32 intermediate scratch
    total += _padded_bytes((tb * h, s), 4)               # flat W-contraction value
    total += 2 * _padded_bytes((s, s), 4)                # per-image (S,S) temporaries
    if h % in_sub:                                       # x2 reshape may relayout-copy
        total += _padded_bytes((tb * h, w), in_item)
    return total


def _vmem_budget_bytes():
    """(budget, physical_cap) for the current TPU generation."""
    cap = 64 << 20  # conservative fallback (v7x per-TensorCore VMEM)
    try:
        cap = int(pltpu.get_tpu_info().vmem_capacity_bytes)
    except Exception:
        pass
    if cap >= (96 << 20):        # v5e / v6e: 128 MiB physical VMEM
        budget = 56 << 20
    else:                        # v7x: 64 MiB per TensorCore
        budget = 36 << 20
    return budget, cap


def _max_tb(nc, h, w, s, in_item, out_item, budget) -> int:
    """Largest number of images per grid step whose estimate fits the budget."""
    if _estimate_vmem_bytes(1, h, w, s, in_item, out_item) > budget:
        return 1
    lo, hi = 1, nc
    while lo < hi:
        mid = (lo + hi + 1) // 2
        if _estimate_vmem_bytes(mid, h, w, s, in_item, out_item) <= budget:
            lo = mid
        else:
            hi = mid - 1
    return lo


# ----------------------------------------------------------------------------
# Kernel
# ----------------------------------------------------------------------------
def _pool_kernel(ph_ref, pwt_ref, x_ref, o_ref, t_ref):
    # ph_ref: (S, H) f32   pwt_ref: (W, S)   x_ref: (TB, H, W)
    # o_ref:  (TB, S, S)   t_ref:   (TB, H, S) f32 scratch
    tb, h, w = x_ref.shape
    s = pwt_ref.shape[1]

    # (1) W-contraction: a single flat MXU matmul over all TB images.
    #     (TB,H,W) -> (TB*H,W) keeps the last dim; the leading merge is cheap.
    x2 = x_ref[...].reshape(tb * h, w)
    t = jnp.dot(x2, pwt_ref[...], preferred_element_type=jnp.float32)  # (TB*H, S) f32
    t_ref[...] = t.reshape(tb, h, s)

    # (2) H-contraction: Ph is loaded ONCE and reused un-broadcast across the
    #     batch (no TB-replicated broadcast); one small 2D MXU matmul per image,
    #     f32 operands / f32 accumulation.
    ph = ph_ref[...]  # (S, H) f32

    def body(b, carry):
        y = jnp.dot(ph, t_ref[b], preferred_element_type=jnp.float32)  # (S, S)
        o_ref[b] = y.astype(o_ref.dtype)
        return carry

    lax.fori_loop(0, tb, body, 0)


# ----------------------------------------------------------------------------
# Wrapper
# ----------------------------------------------------------------------------
def adaptive_avg_pool2d_pallas(x, output_size):
    """x: [N, C, H, W] -> [N, C, S, S] (exact AdaptiveAvgPool2d semantics)."""
    N, C, H, W = x.shape
    S = int(output_size)
    NC = N * C
    out_dtype = x.dtype

    # bf16 inputs keep bf16 MXU operands for the big (X, PwT) matmul (halves the
    # HBM/VMEM bytes of the input tile); everything else runs f32.  Ph is always
    # f32 and the H-contraction is always f32, so only the W-contraction's 1/k
    # weights round for bf16 inputs (documented; acceptable at bf16 tolerances).
    cdt = jnp.bfloat16 if x.dtype == jnp.bfloat16 else jnp.float32
    in_item = np.dtype(cdt).itemsize
    out_item = np.dtype(out_dtype).itemsize

    ph = jnp.asarray(_adaptive_pool_matrix(H, S), dtype=jnp.float32)    # (S, H), exact
    pwt = jnp.asarray(_adaptive_pool_matrix(W, S).T, dtype=cdt)         # (W, S), pre-transposed

    # --- tile sizing (padded-shape accounting, generation-aware budget) -----
    budget, vmem_cap = _vmem_budget_bytes()
    tb_max = _max_tb(NC, H, W, S, in_item, out_item, budget)
    grid = pl.cdiv(NC, tb_max)
    # Keep the "parallel" grid axis splittable evenly across v7x's 2 TensorCores.
    if grid == 1 and NC >= 2:
        grid = 2
    elif grid > 1 and grid % 2 == 1:
        grid += 1
    TB = pl.cdiv(NC, grid)
    NCp = grid * TB

    xf = x.reshape(NC, H, W).astype(cdt)
    if NCp != NC:
        xf = jnp.pad(xf, ((0, NCp - NC), (0, 0), (0, 0)))

    # Explicit scoped-VMEM limit matching (and slightly exceeding) the estimate,
    # so we never rely on the 16 MiB (v5e) / 32 MiB (v6e/v7x) defaults.
    est = _estimate_vmem_bytes(TB, H, W, S, in_item, out_item)
    vmem_limit = est + max(est // 4, 4 << 20)
    vmem_limit = max(vmem_limit, 16 << 20)
    vmem_limit = min(vmem_limit, max(vmem_cap - (8 << 20), 16 << 20))
    vmem_limit = int(vmem_limit)

    out = pl.pallas_call(
        _pool_kernel,
        out_shape=jax.ShapeDtypeStruct((NCp, S, S), out_dtype),
        grid_spec=pltpu.PrefetchScalarGridSpec(
            num_scalar_prefetch=0,
            grid=(grid,),
            in_specs=[
                # Ph / PwT have constant block indices (loaded once, re-used);
                # they are still counted as double-buffered in the VMEM budget.
                pl.BlockSpec((S, H), lambda i: (0, 0)),          # Ph  (f32)
                pl.BlockSpec((W, S), lambda i: (0, 0)),          # PwT
                pl.BlockSpec((TB, H, W), lambda i: (i, 0, 0)),   # TB images / step
            ],
            out_specs=pl.BlockSpec((TB, S, S), lambda i: (i, 0, 0)),
            scratch_shapes=[pltpu.VMEM((TB, H, S), jnp.float32)],
        ),
        compiler_params=pltpu.CompilerParams(
            dimension_semantics=("parallel",),
            vmem_limit_bytes=vmem_limit),
    )(ph, pwt, xf)

    return out[:NC].reshape(N, C, S, S)


# ----------------------------------------------------------------------------
# Module
# ----------------------------------------------------------------------------
class ImageAugmentations:
    """JAX/Pallas port of the PyTorch ImageAugmentations module (aug_prob=0 path)."""

    def __init__(self, output_size, aug_prob, p_min, p_max, patch=False):
        if aug_prob > 0.0:
            # TODO(synk): kornia RandomAffine / RandomPerspective (stochastic warps)
            #             have no clean Pallas equivalent.
            raise NotImplementedError(
                "Only the aug_prob == 0.0 (identity augmentation) path is implemented.")
        self.output_size = output_size
        self.aug_prob = aug_prob
        self.p_min = p_min
        self.p_max = p_max
        self.patch = patch
        # No learnable parameters exist in the reference module.

    def __call__(self, x, num_patch=None, is_global=False):
        if self.patch and not is_global:
            # TODO(synk): kornia RandomResizedCrop patch extraction has no clean
            #             Pallas equivalent.
            raise NotImplementedError(
                "patch=True, is_global=False (RandomResizedCrop) path is not implemented.")
        # With aug_prob == 0 every augmentation is identity, so pooling commutes
        # with the batch extension: pool once, then tile the small pooled output
        # (avoids writing num_patch full-size copies of the input to HBM).
        pooled = adaptive_avg_pool2d_pallas(x, self.output_size)  # [B, C, S, S]
        if num_patch is None or num_patch == 1:
            return pooled
        # [I1, I2, I1, I2, ...] ordering, matching torch.cat / .repeat semantics.
        # jnp.tile lets XLA fuse the replication into the consumer.
        return jnp.tile(pooled, (num_patch, 1, 1, 1))


# ----------------------------------------------------------------------------
# Demo / self-check
# ----------------------------------------------------------------------------
if __name__ == "__main__":
    key = jax.random.PRNGKey(0)
    B, C, H, W = 2, 4, 16, 16
    output_size = 8
    num_patch = 3

    x = jax.random.normal(key, (B, C, H, W), dtype=jnp.float32)

    module = ImageAugmentations(output_size=output_size, aug_prob=0.0,
                                p_min=0.1, p_max=0.5, patch=False)
    out = module(x, num_patch=num_patch)
    out = jax.block_until_ready(out)

    # Reference check (H, W divisible by output_size -> uniform 2x2 mean pooling),
    # computed the "original" way: extend the batch first, then pool.
    x_ext = jnp.concatenate([x] * num_patch, axis=0)
    kh, kw = H // output_size, W // output_size
    ref = x_ext.reshape(B * num_patch, C, output_size, kh, output_size, kw).mean(axis=(3, 5))

    assert out.shape == (B * num_patch, C, output_size, output_size), out.shape
    assert out.dtype == x.dtype
    np.testing.assert_allclose(np.asarray(out), np.asarray(ref), rtol=1e-5, atol=1e-5)

    print("KERNEL_OK")
</pallas_src>

<mosaic_0001>
module attributes {stable_mosaic.version = 11 : i64} {
  func.func @_pool_kernel(%arg0: i32, %arg1: memref<8x16xf32, #tpu.memory_space<vmem>>, %arg2: memref<16x8xf32, #tpu.memory_space<vmem>>, %arg3: memref<4x16x16xf32, #tpu.memory_space<vmem>>, %arg4: memref<4x8x8xf32, #tpu.memory_space<vmem>>, %arg5: memref<4x16x8xf32, #tpu.memory_space<vmem>>) attributes {dimension_semantics = [#tpu.dimension_semantics<parallel>], iteration_bounds = array<i64: 2>, scalar_prefetch = 0 : i64, scratch_operands = 1 : i64, tpu.core_type = #tpu.core_type<tc>, window_params = [{pipeline_mode = #tpu.pipeline_mode<synchronous>, transform_indices = @transform_0, window_bounds = array<i64: 8, 16>}, {pipeline_mode = #tpu.pipeline_mode<synchronous>, transform_indices = @transform_1, window_bounds = array<i64: 16, 8>}, {transform_indices = @transform_2, window_bounds = array<i64: 4, 16, 16>}, {transform_indices = @transform_3, window_bounds = array<i64: 4, 8, 8>}]} {
    %c0 = arith.constant 0 : index
    %c0_0 = arith.constant 0 : index
    %c0_1 = arith.constant 0 : index
    %0 = vector.load %arg3[%c0, %c0_0, %c0_1] : memref<4x16x16xf32, #tpu.memory_space<vmem>>, vector<4x16x16xf32>
    %1 = vector.shape_cast %0 : vector<4x16x16xf32> to vector<64x16xf32>
    %c0_2 = arith.constant 0 : index
    %c0_3 = arith.constant 0 : index
    %2 = vector.load %arg2[%c0_2, %c0_3] : memref<16x8xf32, #tpu.memory_space<vmem>>, vector<16x8xf32>
    %cst = arith.constant dense<0.000000e+00> : vector<64x8xf32>
    %3 = tpu.matmul %1, %2, %cst {dimension_numbers = #tpu.dot_dimension_numbers<[1], [0], [0], [1], [0, 0, 1, 1], [], []>} : vector<64x16xf32>, vector<16x8xf32>, vector<64x8xf32> -> vector<64x8xf32>
    %4 = vector.shape_cast %3 : vector<64x8xf32> to vector<4x16x8xf32>
    %c0_4 = arith.constant 0 : index
    %c0_5 = arith.constant 0 : index
    %c0_6 = arith.constant 0 : index
    %5 = vector.load %arg5[%c0_4, %c0_5, %c0_6] : memref<4x16x8xf32, #tpu.memory_space<vmem>>, vector<4x16x8xf32>
    tpu.vector_store %arg5[%c0_4, %c0_5, %c0_6], %4 {strides = array<i32>} : memref<4x16x8xf32, #tpu.memory_space<vmem>>, vector<4x16x8xf32>,
    %c0_7 = arith.constant 0 : index
    %c0_8 = arith.constant 0 : index
    %6 = vector.load %arg1[%c0_7, %c0_8] : memref<8x16xf32, #tpu.memory_space<vmem>>, vector<8x16xf32>
    %c0_i32 = arith.constant 0 : i32
    %c4_i32 = arith.constant 4 : i32
    %7 = arith.addi %c0_i32, %c4_i32 : i32
    %c1_i32 = arith.constant 1 : i32
    scf.for %arg6 = %c0_i32 to %7 step %c1_i32  : i32 {
      %8 = arith.index_cast %arg6 : i32 to index
      %c0_10 = arith.constant 0 : index
      %c0_11 = arith.constant 0 : index
      %9 = vector.load %arg5[%8, %c0_10, %c0_11] : memref<4x16x8xf32, #tpu.memory_space<vmem>>, vector<1x16x8xf32>
      %10 = vector.shape_cast %9 : vector<1x16x8xf32> to vector<16x8xf32>
      %cst_12 = arith.constant dense<0.000000e+00> : vector<8x8xf32>
      %11 = tpu.matmul %6, %10, %cst_12 {dimension_numbers = #tpu.dot_dimension_numbers<[1], [0], [0], [1], [0, 0, 1, 1], [], []>} : vector<8x16xf32>, vector<16x8xf32>, vector<8x8xf32> -> vector<8x8xf32>
      %12 = arith.index_cast %arg6 : i32 to index
      %c0_13 = arith.constant 0 : index
      %c0_14 = arith.constant 0 : index
      %13 = vector.load %arg4[%12, %c0_13, %c0_14] : memref<4x8x8xf32, #tpu.memory_space<vmem>>, vector<1x8x8xf32>
      %14 = vector.shape_cast %13 : vector<1x8x8xf32> to vector<8x8xf32>
      %15 = vector.shape_cast %11 : vector<8x8xf32> to vector<1x8x8xf32>
      tpu.vector_store %arg4[%12, %c0_13, %c0_14], %15 {strides = array<i32>} : memref<4x8x8xf32, #tpu.memory_space<vmem>>, vector<1x8x8xf32>,
    }
    %c4_i32_9 = arith.constant 4 : i32
    return
  }
  func.func @transform_0(%arg0: i32) -> (i32, i32) {
    %c0_i32 = arith.constant 0 : i32
    %c0_i32_0 = arith.constant 0 : i32
    %c0_i32_1 = arith.constant 0 : i32
    return %c0_i32, %c0_i32_0 : i32, i32
  }
  func.func @transform_1(%arg0: i32) -> (i32, i32) {
    %c0_i32 = arith.constant 0 : i32
    %c0_i32_0 = arith.constant 0 : i32
    %c0_i32_1 = arith.constant 0 : i32
    return %c0_i32, %c0_i32_0 : i32, i32
  }
  func.func @transform_2(%arg0: i32) -> (i32, i32, i32) {
    %c0_i32 = arith.constant 0 : i32
    %c0_i32_0 = arith.constant 0 : i32
    %c0_i32_1 = arith.constant 0 : i32
    return %arg0, %c0_i32, %c0_i32_0 : i32, i32, i32
  }
  func.func @transform_3(%arg0: i32) -> (i32, i32, i32) {
    %c0_i32 = arith.constant 0 : i32
    %c0_i32_0 = arith.constant 0 : i32
    %c0_i32_1 = arith.constant 0 : i32
    return %arg0, %c0_i32, %c0_i32_0 : i32, i32, i32
  }
}

</mosaic_0001>

<bundles_post_ra>
// kernel: tpu_custom_call.1
= control target key start
LH: loop header
LB: loop body
LE: loop exit
PB: predicated region body
PF: predicated region fallthrough
CT: control target
= control target key end

     0   :  { %8 = vsyncpa [#allocation4], 0  ;;  %s993_s0 = inlined_call_operand.vmem [shape: f32[8,16], index: 0, kind: input, shape index: {}]   ;;  %s994_s1 = inlined_call_operand.vmem [shape: f32[16,8], index: 1, kind: input, shape index: {}]   ;;  %s995_s2 = inlined_call_operand.hbm [shape: f32[8,16,16], index: 2, kind: input, shape index: {}]   ;;  %s996_s3 = inlined_call_operand.hbm [shape: f32[8,8,8], index: 3, kind: output, shape index: {}]  }
   0x1   :  { %10 = vsyncpa [#allocation4 + $0x1], 0 }
   0x2   :  { %11 = vsyncpa [#allocation5], 0 }
   0x3   :  { %13 = vsyncpa [#allocation5 + $0x1], 0  ;;  %s794_s12 = smov 0   ;;  %s796_s13 = smov 0  }
   0x4   :  { %s798_s14 = smov 0   ;;  %s800_s15 = smov 0  }
   0x5 LB: > { %s815_s16 = sadd.s32 4294967295, %s759_s15   ;;  %s524_s17 = sadd.s32 4294967294, %s759_s15   ;;  %s759_s15 = sphi %s800_s15, %s1009_s15   ;;  %s755_s14 = sphi %s798_s14, %s1008_s14   ;;  %s751_s13 = sphi %s796_s13, %s1007_s13   ;;  %s747_s12 = sphi %s794_s12, %s1006_s12  }
   0x6   : > { %s819_s18 = sadd.s32 1, %s759_s15   ;;  %s68_s19 = sadd.s32 1, %s755_s14 }
   0x7   : > { %s65_s20 = ssub.s32 %s759_s15, %s819_s18  ;;  %p75_p0 = scmp.ne.s32.totalorder %s755_s14, %s751_s13 }
   0x8   : > { %p66_p1 = scmp.eq.s32.totalorder %s65_s20, 0  ;;  %p76_p2 = scmp.eq.s32.totalorder %s759_s15, 0 }
   0x9   : > { %p81_p3 = scmp.ne.s32.totalorder %s751_s13, %s747_s12  ;;  %p82_p4 = scmp.eq.s32.totalorder %s815_s16, 0 }
   0xa   : > { %s831_s21 = scalar_select %p66_p1, %s755_s14, %s68_s19  }
   0xb   : > { %p833_p5 = por %p76_p2, %p75_p0  ;;  %p837_p6 = por %p82_p4, %p81_p3 }
   0xc   : > { %p105_p7 = scmp.eq.s32.totalorder %s815_s16, 1  ;;  %p111_p8 = scmp.eq.s32.totalorder %s524_s17, 1 }
   0xd   : > { %p610_p10 = scmp.lt.s32.totalorder %s759_s15, 2  ;;  %s137_s26 = sand.u32 1, %s755_s14  }
   0xe   : > { %p844_p11 = por %p105_p7, %p75_p0  ;;  %p848_p12 = por %p111_p8, %p81_p3 }
   0xf   : > { %s551_s27 = sshll.u32 %s759_s15, 10  ;;  %s527_s28 = sshll.u32 %s137_s26, 6 }
  0x10   : > { %s1000_s24 = scalar_select %p844_p11, 1, 0 }
  0x11   : > { %s1001_s25 = scalar_select %p848_p12, 1, 0 }
  0x12   : > { %s857_s4 = scalar_lea.hbm %s995_s2, %s551_s27  ;;  %s141_s5 = scalar_lea.vmem [#allocation3], %s527_s28 }
  0x13   : > { %s149_s6 = sshll.u32 %s141_s5, 4  ;;  %p861_p13 = pnand %p610_p10, %p833_p5  ;;  %s865_s6 = int_to_ptr.vmem [resolvable:$true] %s149_s6 }
  0x14   : > { %s867_s8 = scalar_lea.sflag [#allocation4], %s137_s26  ;;  %s659_s9 = scalar_lea.hbm %s857_s4, 1024 }
  0x15   : > { %p660_p0 = scmp.ne.s32.totalorder %s857_s4, %s659_s9  ;;  %p661_p1 = pneg %p861_p13 }
  0x16   : > { %s664_s17 = scalar_lea.hbm %s995_s2, 2048  ;;  %p665_p4 = scmp.lt.u32.totalorder %s857_s4, %s995_s2 }
  0x17   : > { %p662_p2 = pnand %p661_p1, %p660_p0  ;;  %p666_p5 = scmp.lt.u32.totalorder %s664_s17, %s659_s9 }
  0x18   : > { %p668_p8 = scmp.lt.u32.totalorder %s659_s9, %s857_s4 }
  0x19   : > { %p663_p3 = pneg %p662_p2  ;;  %p667_p7 = por %p666_p5, %p665_p4 }
  0x1b   : > { %p669_p10 = por %p668_p8, %p667_p7 }
  0x1d   : > { %p670_p9 = pnand %p669_p10, %p663_p3 }
  0x1f   : > { %673 = shalt.err (!%p670_p9)
}
  0x20   : > { %s674_s22 = scalar_lea.vmem %s865_s6, 1024  ;;  %s765_s26 = smov [#allocation3]  }
  0x21   : > { %p675_p0 = scmp.ne.s32.totalorder %s865_s6, %s674_s22  ;;  %s679_s27 = sshll.u32 %s765_s26, 4  ;;  %s680_s27 = int_to_ptr.vmem [resolvable:$false] %s679_s27 }
  0x22   : > { %s681_s28 = scalar_lea.vmem %s680_s27, 2048  ;;  %p682_p11 = scmp.lt.s32.totalorder %s865_s6, %s680_s27 }
  0x23   : > { %p677_p2 = pnand %p675_p0, %p661_p1  ;;  %p683_p4 = scmp.lt.s32.totalorder %s681_s28, %s674_s22 }
  0x25   : > { %p678_p12 = pneg %p677_p2  ;;  %p684_p5 = por %p683_p4, %p682_p11 }
  0x27   : > { %p685_p7 = pnand %p684_p5, %p678_p12 }
  0x29   : > { %688 = shalt.err (!%p685_p7)
}
  0x2a   : > { %s766_s29 = smov 128   ;;  %s767_s30 = smov 8  }
  0x2b   : > { %605 = dma.hbm_to_vmem [thread:$0]  (!%p861_p13), %s857_s4, 1024, %s865_s6, %s867_s8, %s766_s29, %s766_s29, %s767_s30  }
  0x2c   : > { %p531_p9 = scmp.ge.s32.totalorder %s759_s15, 1  ;;  %p157_p1 = scmp.lt.s32.totalorder %s759_s15, 3 }
  0x2e   : > { %p158_p3 = pnand %p531_p9, %p157_p1 }
  0x2f   : > { %s898_s5 = sand.u32 (!%p158_p3), 1, %s751_s13  }
  0x30   : > { %161 = sbr.rel (%p158_p3) target bundleno = 522 (0x20a), region = 32  ;;  %s532_s9 = sshll.u32 (!%p158_p3), %s898_s5, 6 }
  0x31   : > { %s164_s10 = scalar_lea.sflag (!%p158_p3), [#allocation4], %s898_s5  ;;  %s167_s11 = scalar_lea.vmem (!%p158_p3), [#allocation3], %s532_s9 }
  0x37   : > { %738 = dma.done.wait (%p837_p6), %s164_s10, 1024  }
  0x38   : > { %740 = vsyncadd (%p837_p6), %s164_s10, 4294966272  ;;  %s533_s4 = sshll.u32 %s898_s5, 5  ;;  %vm202_vm0 = vcmask 130048   ;;  %v910_v0 = vld [vmem:[%s993_s0] sm:$0xff]  ;;  %v201_v2 = vld [vmem:[%s994_s1 + $0x8] sm:$0xff]  ;;  %vm332_vm1 = vcmask 64512  }
  0x39   : > { %v200_v1 = vld [vmem:[%s994_s1] sm:$0xff]  ;;  %v193_v6 = vld [vmem:[%s167_s11 + $0x8] sm:$0xff]  ;;  %v194_v8 = vld [vmem:[%s167_s11 + $0x10] sm:$0xff]  ;;  %s936_s23 = scalar_lea.vmem [#allocation6], %s533_s4  ;;  %s761_s22 = smov 0  }
  0x3a   : > { %v589_v3 = vpack.c.bf16 %v201_v2, %v200_v1  ;;  %v192_v4 = vld [vmem:[%s167_s11] sm:$0xff]  ;;  %v197_v7 = vld [vmem:[%s167_s11 + $0x28] sm:$0xff]  ;;  %v198_v9 = vld [vmem:[%s167_s11 + $0x30] sm:$0xff] }
  0x3b   : > { %v196_v5 = vld [vmem:[%s167_s11 + $0x20] sm:$0xff]  ;;  %570 = vmatprep.mubr.msk.f32.mxu0 %vm202_vm0, %v192_v4  ;;  %v195_v10 = vld [vmem:[%s167_s11 + $0x18] sm:$0xff] }
  0x3c   : > { %576 = vmatprep.mubr.msk.f32.mxu1 %vm202_vm0, %v196_v5  ;;  %590 = vmatprep.subr.bf16.mxu0 %v589_v3  ;;  %v199_v11 = vld [vmem:[%s167_s11 + $0x38] sm:$0xff] }
  0x3d   : > { %596 = vmatprep.subr.bf16.mxu1 %v589_v3  ;;  %592 = vmatpush3.bf16.msra.mxu0 %v589_v3 }
  0x3e   : > { %597 = vmatpush3.bf16.msra.mxu1 %v589_v3 }
  0x40   : > { %571 = vmatmul.mubr.msk.f32.vlgmr.msra.gmra.mrb[0].mxu0 %vm202_vm0, %v193_v6 }
  0x41   : > { %577 = vmatmul.mubr.msk.f32.vlgmr.msra.gmra.mrb[0].mxu1 %vm202_vm0, %v197_v7  ;;  %573 = vmatprep.mubr.msk.f32.mxu0 %vm202_vm0, %v194_v8 }
  0x42   : > { %579 = vmatprep.mubr.msk.f32.mxu1 %vm202_vm0, %v198_v9 }
  0x44   : > { %574 = vmatmul.mubr.msk.f32.gmra.mrb[2].mxu0 %vm202_vm0, %v195_v10 }
  0x45   : > { %580 = vmatmul.mubr.msk.f32.gmra.mrb[2].mxu1 %vm202_vm0, %v199_v11 }
 0x113   : > { %v572_v12 = vpop.f32.mrb[0].mxu0 }
 0x114   : > { %v578_v13 = vpop.f32.mrb[0].mxu1  ;;  %334 = vst.msk [vmem:[#allocation2 + $0x8] sm:$0xff] %vm332_vm1, %v572_v12  ;;  %v293_v14 = vpop.f32.mrb[1].mxu0 }
 0x115   : > { %338 = vst.msk [vmem:[#allocation2 + $0x28] sm:$0xff] %vm332_vm1, %v578_v13  ;;  %v313_v15 = vpop.f32.mrb[1].mxu1  ;;  %333 = vst.msk [vmem:[#allocation2] sm:$0xff] %vm332_vm1, %v293_v14 }
 0x116   : > { %337 = vst.msk [vmem:[#allocation2 + $0x20] sm:$0xff] %vm332_vm1, %v313_v15 }
 0x117   : > { %v575_v16 = vpop.f32.mrb[2].mxu0 }
 0x118   : > { %v581_v17 = vpop.f32.mrb[2].mxu1  ;;  %336 = vst.msk [vmem:[#allocation2 + $0x18] sm:$0xff] %vm332_vm1, %v575_v16  ;;  %v303_v18 = vpop.f32.mrb[3].mxu0 }
 0x119   : > { %340 = vst.msk [vmem:[#allocation2 + $0x38] sm:$0xff] %vm332_vm1, %v581_v17  ;;  %v323_v19 = vpop.f32.mrb[3].mxu1  ;;  %335 = vst.msk [vmem:[#allocation2 + $0x10] sm:$0xff] %vm332_vm1, %v303_v18 }
 0x11a   : > { %339 = vst.msk [vmem:[#allocation2 + $0x30] sm:$0xff] %vm332_vm1, %v323_v19 }
 0x11b LB: >> { %v768_v20 = vmov 0.0|0.0   ;;  %vm769_vm2 = vmmov 0   ;;  %v770_v21 = vmov 0.0   ;;  %s542_s26 = sshll.u32 %s763_s22, 4  ;;  %s544_s28 = sshll.u32 %s763_s22, 3  ;;  %s763_s22 = sphi %s761_s22, %s347_s22  }
 0x11c   : >> { %593 = vmatprep.subr.bf16.mxu0 %v768_v20  ;;  %586 = vmatprep.mubr.msk.f32.mxu0 %vm769_vm2, %v770_v21  ;;  %s349_s27 = scalar_lea.vmem [#allocation2], %s542_s26  ;;  %s426_s29 = scalar_lea.vmem %s936_s23, %s544_s28 [#allocation6] }
 0x11d   : >> { %s347_s22 = sadd.s32 1, %s763_s22  }
 0x11e   : >> { %p344_p6 = scmp.ge.s32.totalorder %s347_s22, 4  }
 0x11f   : > { %s552_s30 = sshll.u32 (%p344_p6), %s815_s16, 9  ;;  %s442_s4 = sshll.u32 (%p344_p6), %s936_s23, 4  ;;  %s949_s4 = int_to_ptr.vmem [resolvable:$true] %s442_s4 }
 0x120   : > { %s946_s11 = scalar_lea.hbm (%p344_p6), %s996_s3, %s552_s30  ;;  %s429_s6 = scalar_lea.sflag (%p344_p6), [#allocation5], %s898_s5 }
 0x121   : >> { %v350_v22 = vld [vmem:[%s349_s27] sm:$0xff]  ;;  %v351_v23 = vld [vmem:[%s349_s27 + $0x8] sm:$0xff]  ;;  %s689_s7 = scalar_lea.vmem (%p344_p6), %s949_s4, 512  ;;  %p1003_p12 = scmp.ne.s32.totalorder (%p344_p6), %s1000_s24, 0 }
 0x122   : >> { %v594_v24 = vpack.c.bf16 %v351_v23, %v350_v22  ;;  %p690_p11 = scmp.ne.s32.totalorder (%p344_p6), %s949_s4, %s689_s7  ;;  %s771_s8 = smov (%p344_p6), [#allocation6]  }
 0x123   : > { %s693_s17 = sshll.u32 (%p344_p6), %s771_s8, 4  ;;  %s694_s17 = int_to_ptr.vmem [resolvable:$false] %s693_s17 }
 0x124   : >> { %595 = vmatpush3.bf16.msra.mxu0 %v594_v24  ;;  %p691_p13 = pnand (%p344_p6), %p690_p11, %p1003_p12  ;;  %s695_s16 = scalar_lea.vmem (%p344_p6), %s694_s17, 1024 }
 0x125   : > { %p696_p10 = scmp.lt.s32.totalorder (%p344_p6), %s949_s4, %s694_s17  ;;  %p697_p0 = scmp.lt.s32.totalorder (%p344_p6), %s695_s16, %s689_s7 }
 0x126   : > { %p692_p8 = pneg (%p344_p6), %p691_p13 }
 0x127   : >> { %587 = vmatmul.mubr.msk.f32.vlgmr.msra.gmra.mrb[0].mxu0 %vm202_vm0, %v910_v0  ;;  %p698_p2 = por (%p344_p6), %p697_p0, %p696_p10 }
 0x129   : > { %p699_p4 = pnand (%p344_p6), %p698_p2, %p692_p8 }
 0x1f5   : > { %346 = sbr.rel (!%p344_p6) target bundleno = 283 (0x11b), region = 86 }
 0x1fa   : >> { %v421_v25 = vpop.f32.mrb[0].mxu0 }
 0x1fb   : >> { %427 = vst.msk [vmem:[%s426_s29] sm:$0xff] %vm332_vm1, %v421_v25  ;;  %v588_v26 = vpop.f32.mrb[1].mxu0 }
 0x1fc   : > { %702 = shalt.err (!%p699_p4)
}
 0x1fd   : > { %s703_s19 = scalar_lea.hbm %s946_s11, 512  ;;  %s707_s22 = scalar_lea.hbm %s996_s3, 1024 }
 0x1fe   : > { %p704_p5 = scmp.ne.s32.totalorder %s946_s11, %s703_s19  ;;  %p708_p1 = scmp.lt.u32.totalorder %s946_s11, %s996_s3 }
 0x1ff   : > { %p709_p3 = scmp.lt.u32.totalorder %s707_s22, %s703_s19  ;;  %p711_p11 = scmp.lt.u32.totalorder %s703_s19, %s946_s11 }
 0x200   : > { %p705_p7 = pnand %p704_p5, %p1003_p12 }
 0x201   : > { %p710_p6 = por %p709_p3, %p708_p1 }
 0x202   : > { %p706_p9 = pneg %p705_p7 }
 0x203   : > { %p712_p13 = por %p711_p11, %p710_p6 }
 0x205   : > { %p713_p8 = pnand %p712_p13, %p706_p9 }
 0x207   : > { %716 = shalt.err (!%p713_p8)
}
 0x208   : > { %s772_s28 = smov 128   ;;  %s773_s29 = smov 8  }
 0x209   : > { %600 = dma.vmem_to_hbm [thread:$0]  (%p1003_p12), %s949_s4, 512, %s946_s11, %s429_s6, %s772_s28, %s772_s28, %s773_s29  }
 0x20a PF: > { %s457_s30 = sand.u32 1, %s747_s12   ;;  %p1004_p10 = scmp.ne.s32.totalorder %s1001_s25, 0 }
 0x20b   : > { %p1005_p0 = scmp.ge.s32.totalorder %s759_s15, 2  ;;  %s458_s9 = scalar_lea.sflag [#allocation5], %s457_s30 }
 0x20d   : > { %p607_p2 = pnand %p1005_p0, %p1004_p10 }
 0x20f   : > { %742 = dma.done.wait (!%p607_p2), %s458_s9, 512  }
 0x210   : > { %744 = vsyncadd (!%p607_p2), %s458_s9, 4294966784  ;;  %p16_p4 = scmp.ge.s32.totalorder %s819_s18, 4   ;;  %s1006_s12 = smov %s751_s13 }
 0x211   : > { %s1007_s13 = smov %s755_s14  ;;  %s1008_s14 = smov %s831_s21 }
 0x212   : > { %s1009_s15 = smov %s819_s18  ;;  %18 = sbr.rel (!%p16_p4) target bundleno = 5 (0x5), region = 97 }
 0x219   :  { %463 = vsyncpa [#allocation4], 1 }
 0x21a   :  { %465 = vsyncpa [#allocation4 + $0x1], 1 }
 0x21b   :  { %466 = vsyncpa [#allocation5], 1 }
 0x21c   :  { %468 = vsyncpa [#allocation5 + $0x1], 1 }

</bundles_post_ra>
